<compile_context>
chip_gen: v7x
topology: tpu7x:2x2x1
jax: 0.10.0
libtpu: 0.0.40
codegen_flags: <defaults>
</compile_context>

<pallas_src>
import functools

import jax
import jax.numpy as jnp
from jax.experimental import pallas as pl
from jax.experimental.pallas import tpu as pltpu


def _conv_bn_relu_kernel(x_ref, w_ref, b_ref, m_ref, o_ref, *, width):
    # x_ref: (Cin,  H*W)     f32   one image, NCHW with spatial flattened on lanes
    # w_ref: (9, Cout, Cin)  bf16  BN-folded conv weights, tap-major (kh, kw)
    # b_ref: (Cout, 1)       f32   BN-folded bias
    # m_ref: (2, H*W)        bf16  column-validity masks (w>=1, w<=W-2), {0,1}
    # o_ref: (Cout, H*W)     f32   one image, NCHW with spatial flattened on lanes
    cin, hw = x_ref.shape
    cout = o_ref.shape[0]

    x = x_ref[...].astype(w_ref.dtype)     # single cast, bf16 operands for the MXU

    masks = m_ref[...]
    keep_left = masks[0:1, :]              # zero where the read column w-1 < 0
    keep_right = masks[1:2, :]             # zero where the read column w+1 >= W

    def shift(v, s):
        # y[:, p] = v[:, p + s] if 0 <= p + s < hw else 0   (static s)
        if s == 0:
            return v
        pad = jnp.zeros((v.shape[0], abs(s)), v.dtype)
        if s > 0:
            return jnp.concatenate([v[:, s:], pad], axis=1)
        return jnp.concatenate([pad, v[:, :hw + s]], axis=1)

    # 9 accumulating matmuls (K = Cin each) into an f32 accumulator — no 9x
    # im2col LHS is ever materialized.
    acc = jnp.zeros((cout, hw), jnp.float32)
    tap = 0
    for dh in (-1, 0, 1):
        for dw in (-1, 0, 1):
            xs = shift(x, dh * width + dw)
            if dw == -1:
                xs = xs * keep_left
            elif dw == 1:
                xs = xs * keep_right
            acc = acc + jnp.dot(w_ref[tap], xs,
                                preferred_element_type=jnp.float32)
            tap += 1

    o_ref[...] = jnp.maximum(acc + b_ref[...], 0.0).astype(o_ref.dtype)


def fused_conv2d_batchnorm_relu(x_nchw, weight, bias, gamma, beta,
                                running_mean, running_var, eps=1e-5,
                                compute_dtype=jnp.bfloat16,
                                out_dtype=jnp.float32):
    """Conv2d(3x3, stride 1, padding=1) + BatchNorm2d(eval) + ReLU, NCHW."""
    N, Cin, H, W = x_nchw.shape
    Cout = weight.shape[0]
    HW = H * W
    f32 = jnp.float32

    # ---- Fold BatchNorm (inference, running stats) + conv bias into weights.
    inv_std = jax.lax.rsqrt(running_var.astype(f32) + f32(eps))
    scale = gamma.astype(f32) * inv_std                                   # (Cout,)
    w_folded = weight.astype(f32) * scale[:, None, None, None]            # OIHW
    b_folded = (bias.astype(f32) - running_mean.astype(f32)) * scale \
        + beta.astype(f32)                                                # (Cout,)

    # OIHW -> (kh, kw, Cout, Cin) -> (9, Cout, Cin); tap order matches the
    # kernel's (dh, dw) loops with kh = dh + 1, kw = dw + 1.
    w_taps = jnp.transpose(w_folded, (2, 3, 0, 1)).reshape(9, Cout, Cin)
    w_taps = w_taps.astype(compute_dtype)
    b2 = b_folded.reshape(Cout, 1)                                        # f32

    # Column-validity masks for the w-1 / w+1 taps ({0,1}); tiny constant.
    col = jnp.arange(HW, dtype=jnp.int32) % W
    col_masks = jnp.stack([col >= 1, col < W - 1]).astype(compute_dtype)  # (2, HW)

    # Free (view) reshape: NCHW with the spatial dims flattened onto lanes.
    x3 = x_nchw.reshape(N, Cin, HW)

    # Rough per-step VMEM budget (double-buffered in/out blocks + weights),
    # clamped so it also respects v7x's 64 MiB VMEM.
    def _rup(v, m):
        return -(-v // m) * m
    blk_in = _rup(Cin, 8) * _rup(HW, 128) * 4
    blk_out = _rup(Cout, 8) * _rup(HW, 128) * 4
    blk_w = 9 * _rup(Cout, 16) * _rup(Cin, 128) * 2
    blk_misc = (_rup(Cout, 8) * 128 + 2 * _rup(HW, 128)) * 4
    est = 2 * (blk_in + blk_out) + blk_w + blk_misc
    vmem_limit = int(min(max(8 * est, 16 << 20), 48 << 20))
    # TODO(synk): for large images / channels (v7x: H,W >= ~56 or Cin >= 64),
    # tile H into halo'd strips via manual DMA, and batch several small images
    # per grid step when N is large and H*W is tiny.

    kernel = functools.partial(_conv_bn_relu_kernel, width=W)

    out3 = pl.pallas_call(
        kernel,
        out_shape=jax.ShapeDtypeStruct((N, Cout, HW), out_dtype),
        grid_spec=pltpu.PrefetchScalarGridSpec(
            num_scalar_prefetch=0,
            grid=(N,),
            in_specs=[
                pl.BlockSpec((None, Cin, HW), lambda n: (n, 0, 0)),
                pl.BlockSpec((9, Cout, Cin), lambda n: (0, 0, 0)),
                pl.BlockSpec((Cout, 1), lambda n: (0, 0)),
                pl.BlockSpec((2, HW), lambda n: (0, 0)),
            ],
            out_specs=pl.BlockSpec((None, Cout, HW), lambda n: (n, 0, 0)),
        ),
        compiler_params=pltpu.CompilerParams(
            dimension_semantics=("parallel",),
            vmem_limit_bytes=vmem_limit),
    )(x3, w_taps, b2, col_masks)

    # Free view reshape back to NCHW — no channel padding to strip, no transpose.
    return out3.reshape(N, Cout, H, W)


if __name__ == "__main__":
    key = jax.random.PRNGKey(0)
    kx, kw, kb, kg, kbe, km, kv = jax.random.split(key, 7)

    N, Cin, Cout, H, W = 2, 4, 8, 16, 16
    eps = 1e-5

    # Deterministic synthetic parameters (shapes per nn.Conv2d / nn.BatchNorm2d).
    x = jax.random.normal(kx, (N, Cin, H, W), jnp.float32)
    weight = jax.random.normal(kw, (Cout, Cin, 3, 3), jnp.float32) * 0.1
    bias = jax.random.normal(kb, (Cout,), jnp.float32) * 0.1
    gamma = jax.random.uniform(kg, (Cout,), jnp.float32, minval=0.5, maxval=1.5)
    beta = jax.random.normal(kbe, (Cout,), jnp.float32) * 0.1
    running_mean = jax.random.normal(km, (Cout,), jnp.float32) * 0.1
    running_var = jax.random.uniform(kv, (Cout,), jnp.float32,
                                     minval=0.5, maxval=1.5)

    out = fused_conv2d_batchnorm_relu(x, weight, bias, gamma, beta,
                                      running_mean, running_var, eps)
    out = jax.block_until_ready(out)

    # Pure-JAX f32 reference (conv -> bias -> BN(inference) -> ReLU), NCHW.
    conv = jax.lax.conv_general_dilated(
        x, weight, window_strides=(1, 1), padding="SAME",
        dimension_numbers=("NCHW", "OIHW", "NCHW"))
    conv = conv + bias[None, :, None, None]
    inv_std = 1.0 / jnp.sqrt(running_var + eps)
    ref = (conv - running_mean[None, :, None, None]) * \
        (gamma * inv_std)[None, :, None, None] + beta[None, :, None, None]
    ref = jnp.maximum(ref, 0.0)

    assert out.shape == (N, Cout, H, W)
    # bf16 matmul operands with f32 accumulation -> loosened tolerance vs f32 ref.
    assert jnp.allclose(out, ref, atol=3e-2, rtol=3e-2), "mismatch vs reference"
    print("KERNEL_OK")
</pallas_src>

<mosaic_0001>
module attributes {stable_mosaic.version = 11 : i64} {
  func.func @_conv_bn_relu_kernel(%arg0: i32, %arg1: memref<1x4x256xf32, #tpu.memory_space<vmem>>, %arg2: memref<9x8x4xbf16, #tpu.memory_space<vmem>>, %arg3: memref<8x1xf32, #tpu.memory_space<vmem>>, %arg4: memref<2x256xbf16, #tpu.memory_space<vmem>>, %arg5: memref<1x8x256xf32, #tpu.memory_space<vmem>>) attributes {dimension_semantics = [#tpu.dimension_semantics<parallel>], iteration_bounds = array<i64: 2>, scalar_prefetch = 0 : i64, scratch_operands = 0 : i64, tpu.core_type = #tpu.core_type<tc>, window_params = [{transform_indices = @transform_0, window_bounds = array<i64: 1, 4, 256>}, {pipeline_mode = #tpu.pipeline_mode<synchronous>, transform_indices = @transform_1, window_bounds = array<i64: 9, 8, 4>}, {pipeline_mode = #tpu.pipeline_mode<synchronous>, transform_indices = @transform_2, window_bounds = array<i64: 8, 1>}, {pipeline_mode = #tpu.pipeline_mode<synchronous>, transform_indices = @transform_3, window_bounds = array<i64: 2, 256>}, {transform_indices = @transform_4, window_bounds = array<i64: 1, 8, 256>}]} {
    %c0 = arith.constant 0 : index
    %c0_0 = arith.constant 0 : index
    %c0_1 = arith.constant 0 : index
    %0 = vector.load %arg1[%c0, %c0_0, %c0_1] : memref<1x4x256xf32, #tpu.memory_space<vmem>>, vector<1x4x256xf32>
    %1 = vector.shape_cast %0 : vector<1x4x256xf32> to vector<4x256xf32>
    %2 = arith.truncf %1 : vector<4x256xf32> to vector<4x256xbf16>
    %c0_2 = arith.constant 0 : index
    %c0_3 = arith.constant 0 : index
    %3 = vector.load %arg4[%c0_2, %c0_3] : memref<2x256xbf16, #tpu.memory_space<vmem>>, vector<2x256xbf16>
    %4 = vector.extract_strided_slice %3 {offsets = [0, 0], sizes = [1, 256], strides = [1, 1]} : vector<2x256xbf16> to vector<1x256xbf16>
    %5 = vector.extract_strided_slice %3 {offsets = [1, 0], sizes = [1, 256], strides = [1, 1]} : vector<2x256xbf16> to vector<1x256xbf16>
    %cst = arith.constant 0.000000e+00 : f32
    %6 = vector.broadcast %cst : f32 to vector<8x256xf32>
    %cst_4 = arith.constant 0.000000e+00 : bf16
    %7 = vector.broadcast %cst_4 : bf16 to vector<4x17xbf16>
    %8 = vector.extract_strided_slice %2 {offsets = [0, 0], sizes = [4, 239], strides = [1, 1]} : vector<4x256xbf16> to vector<4x239xbf16>
    %9 = tpu.concatenate %7, %8 in 1 : vector<4x17xbf16>, vector<4x239xbf16> -> vector<4x256xbf16>
    %10 = vector.broadcast %4 : vector<1x256xbf16> to vector<4x256xbf16>
    %11 = arith.mulf %9, %10 : vector<4x256xbf16>
    %c0_5 = arith.constant 0 : index
    %c0_6 = arith.constant 0 : index
    %c0_7 = arith.constant 0 : index
    %12 = vector.load %arg2[%c0_5, %c0_6, %c0_7] : memref<9x8x4xbf16, #tpu.memory_space<vmem>>, vector<1x8x4xbf16>
    %13 = vector.shape_cast %12 : vector<1x8x4xbf16> to vector<8x4xbf16>
    %cst_8 = arith.constant dense<0.000000e+00> : vector<8x256xf32>
    %14 = tpu.matmul %13, %11, %cst_8 {dimension_numbers = #tpu.dot_dimension_numbers<[1], [0], [0], [1], [0, 0, 1, 1], [], []>} : vector<8x4xbf16>, vector<4x256xbf16>, vector<8x256xf32> -> vector<8x256xf32>
    %15 = arith.addf %6, %14 : vector<8x256xf32>
    %cst_9 = arith.constant 0.000000e+00 : bf16
    %16 = vector.broadcast %cst_9 : bf16 to vector<4x16xbf16>
    %17 = vector.extract_strided_slice %2 {offsets = [0, 0], sizes = [4, 240], strides = [1, 1]} : vector<4x256xbf16> to vector<4x240xbf16>
    %18 = tpu.concatenate %16, %17 in 1 : vector<4x16xbf16>, vector<4x240xbf16> -> vector<4x256xbf16>
    %c1 = arith.constant 1 : index
    %c0_10 = arith.constant 0 : index
    %c0_11 = arith.constant 0 : index
    %19 = vector.load %arg2[%c1, %c0_10, %c0_11] : memref<9x8x4xbf16, #tpu.memory_space<vmem>>, vector<1x8x4xbf16>
    %20 = vector.shape_cast %19 : vector<1x8x4xbf16> to vector<8x4xbf16>
    %cst_12 = arith.constant dense<0.000000e+00> : vector<8x256xf32>
    %21 = tpu.matmul %20, %18, %cst_12 {dimension_numbers = #tpu.dot_dimension_numbers<[1], [0], [0], [1], [0, 0, 1, 1], [], []>} : vector<8x4xbf16>, vector<4x256xbf16>, vector<8x256xf32> -> vector<8x256xf32>
    %22 = arith.addf %15, %21 : vector<8x256xf32>
    %cst_13 = arith.constant 0.000000e+00 : bf16
    %23 = vector.broadcast %cst_13 : bf16 to vector<4x15xbf16>
    %24 = vector.extract_strided_slice %2 {offsets = [0, 0], sizes = [4, 241], strides = [1, 1]} : vector<4x256xbf16> to vector<4x241xbf16>
    %25 = tpu.concatenate %23, %24 in 1 : vector<4x15xbf16>, vector<4x241xbf16> -> vector<4x256xbf16>
    %26 = vector.broadcast %5 : vector<1x256xbf16> to vector<4x256xbf16>
    %27 = arith.mulf %25, %26 : vector<4x256xbf16>
    %c2 = arith.constant 2 : index
    %c0_14 = arith.constant 0 : index
    %c0_15 = arith.constant 0 : index
    %28 = vector.load %arg2[%c2, %c0_14, %c0_15] : memref<9x8x4xbf16, #tpu.memory_space<vmem>>, vector<1x8x4xbf16>
    %29 = vector.shape_cast %28 : vector<1x8x4xbf16> to vector<8x4xbf16>
    %cst_16 = arith.constant dense<0.000000e+00> : vector<8x256xf32>
    %30 = tpu.matmul %29, %27, %cst_16 {dimension_numbers = #tpu.dot_dimension_numbers<[1], [0], [0], [1], [0, 0, 1, 1], [], []>} : vector<8x4xbf16>, vector<4x256xbf16>, vector<8x256xf32> -> vector<8x256xf32>
    %31 = arith.addf %22, %30 : vector<8x256xf32>
    %cst_17 = arith.constant 0.000000e+00 : bf16
    %32 = vector.broadcast %cst_17 : bf16 to vector<4x1xbf16>
    %33 = vector.extract_strided_slice %2 {offsets = [0, 0], sizes = [4, 255], strides = [1, 1]} : vector<4x256xbf16> to vector<4x255xbf16>
    %34 = tpu.concatenate %32, %33 in 1 : vector<4x1xbf16>, vector<4x255xbf16> -> vector<4x256xbf16>
    %35 = vector.broadcast %4 : vector<1x256xbf16> to vector<4x256xbf16>
    %36 = arith.mulf %34, %35 : vector<4x256xbf16>
    %c3 = arith.constant 3 : index
    %c0_18 = arith.constant 0 : index
    %c0_19 = arith.constant 0 : index
    %37 = vector.load %arg2[%c3, %c0_18, %c0_19] : memref<9x8x4xbf16, #tpu.memory_space<vmem>>, vector<1x8x4xbf16>
    %38 = vector.shape_cast %37 : vector<1x8x4xbf16> to vector<8x4xbf16>
    %cst_20 = arith.constant dense<0.000000e+00> : vector<8x256xf32>
    %39 = tpu.matmul %38, %36, %cst_20 {dimension_numbers = #tpu.dot_dimension_numbers<[1], [0], [0], [1], [0, 0, 1, 1], [], []>} : vector<8x4xbf16>, vector<4x256xbf16>, vector<8x256xf32> -> vector<8x256xf32>
    %40 = arith.addf %31, %39 : vector<8x256xf32>
    %c4 = arith.constant 4 : index
    %c0_21 = arith.constant 0 : index
    %c0_22 = arith.constant 0 : index
    %41 = vector.load %arg2[%c4, %c0_21, %c0_22] : memref<9x8x4xbf16, #tpu.memory_space<vmem>>, vector<1x8x4xbf16>
    %42 = vector.shape_cast %41 : vector<1x8x4xbf16> to vector<8x4xbf16>
    %cst_23 = arith.constant dense<0.000000e+00> : vector<8x256xf32>
    %43 = tpu.matmul %42, %2, %cst_23 {dimension_numbers = #tpu.dot_dimension_numbers<[1], [0], [0], [1], [0, 0, 1, 1], [], []>} : vector<8x4xbf16>, vector<4x256xbf16>, vector<8x256xf32> -> vector<8x256xf32>
    %44 = arith.addf %40, %43 : vector<8x256xf32>
    %cst_24 = arith.constant 0.000000e+00 : bf16
    %45 = vector.broadcast %cst_24 : bf16 to vector<4x1xbf16>
    %46 = vector.extract_strided_slice %2 {offsets = [0, 1], sizes = [4, 255], strides = [1, 1]} : vector<4x256xbf16> to vector<4x255xbf16>
    %47 = tpu.concatenate %46, %45 in 1 : vector<4x255xbf16>, vector<4x1xbf16> -> vector<4x256xbf16>
    %48 = vector.broadcast %5 : vector<1x256xbf16> to vector<4x256xbf16>
    %49 = arith.mulf %47, %48 : vector<4x256xbf16>
    %c5 = arith.constant 5 : index
    %c0_25 = arith.constant 0 : index
    %c0_26 = arith.constant 0 : index
    %50 = vector.load %arg2[%c5, %c0_25, %c0_26] : memref<9x8x4xbf16, #tpu.memory_space<vmem>>, vector<1x8x4xbf16>
    %51 = vector.shape_cast %50 : vector<1x8x4xbf16> to vector<8x4xbf16>
    %cst_27 = arith.constant dense<0.000000e+00> : vector<8x256xf32>
    %52 = tpu.matmul %51, %49, %cst_27 {dimension_numbers = #tpu.dot_dimension_numbers<[1], [0], [0], [1], [0, 0, 1, 1], [], []>} : vector<8x4xbf16>, vector<4x256xbf16>, vector<8x256xf32> -> vector<8x256xf32>
    %53 = arith.addf %44, %52 : vector<8x256xf32>
    %cst_28 = arith.constant 0.000000e+00 : bf16
    %54 = vector.broadcast %cst_28 : bf16 to vector<4x15xbf16>
    %55 = vector.extract_strided_slice %2 {offsets = [0, 15], sizes = [4, 241], strides = [1, 1]} : vector<4x256xbf16> to vector<4x241xbf16>
    %56 = tpu.concatenate %55, %54 in 1 : vector<4x241xbf16>, vector<4x15xbf16> -> vector<4x256xbf16>
    %57 = vector.broadcast %4 : vector<1x256xbf16> to vector<4x256xbf16>
    %58 = arith.mulf %56, %57 : vector<4x256xbf16>
    %c6 = arith.constant 6 : index
    %c0_29 = arith.constant 0 : index
    %c0_30 = arith.constant 0 : index
    %59 = vector.load %arg2[%c6, %c0_29, %c0_30] : memref<9x8x4xbf16, #tpu.memory_space<vmem>>, vector<1x8x4xbf16>
    %60 = vector.shape_cast %59 : vector<1x8x4xbf16> to vector<8x4xbf16>
    %cst_31 = arith.constant dense<0.000000e+00> : vector<8x256xf32>
    %61 = tpu.matmul %60, %58, %cst_31 {dimension_numbers = #tpu.dot_dimension_numbers<[1], [0], [0], [1], [0, 0, 1, 1], [], []>} : vector<8x4xbf16>, vector<4x256xbf16>, vector<8x256xf32> -> vector<8x256xf32>
    %62 = arith.addf %53, %61 : vector<8x256xf32>
    %cst_32 = arith.constant 0.000000e+00 : bf16
    %63 = vector.broadcast %cst_32 : bf16 to vector<4x16xbf16>
    %64 = vector.extract_strided_slice %2 {offsets = [0, 16], sizes = [4, 240], strides = [1, 1]} : vector<4x256xbf16> to vector<4x240xbf16>
    %65 = tpu.concatenate %64, %63 in 1 : vector<4x240xbf16>, vector<4x16xbf16> -> vector<4x256xbf16>
    %c7 = arith.constant 7 : index
    %c0_33 = arith.constant 0 : index
    %c0_34 = arith.constant 0 : index
    %66 = vector.load %arg2[%c7, %c0_33, %c0_34] : memref<9x8x4xbf16, #tpu.memory_space<vmem>>, vector<1x8x4xbf16>
    %67 = vector.shape_cast %66 : vector<1x8x4xbf16> to vector<8x4xbf16>
    %cst_35 = arith.constant dense<0.000000e+00> : vector<8x256xf32>
    %68 = tpu.matmul %67, %65, %cst_35 {dimension_numbers = #tpu.dot_dimension_numbers<[1], [0], [0], [1], [0, 0, 1, 1], [], []>} : vector<8x4xbf16>, vector<4x256xbf16>, vector<8x256xf32> -> vector<8x256xf32>
    %69 = arith.addf %62, %68 : vector<8x256xf32>
    %cst_36 = arith.constant 0.000000e+00 : bf16
    %70 = vector.broadcast %cst_36 : bf16 to vector<4x17xbf16>
    %71 = vector.extract_strided_slice %2 {offsets = [0, 17], sizes = [4, 239], strides = [1, 1]} : vector<4x256xbf16> to vector<4x239xbf16>
    %72 = tpu.concatenate %71, %70 in 1 : vector<4x239xbf16>, vector<4x17xbf16> -> vector<4x256xbf16>
    %73 = vector.broadcast %5 : vector<1x256xbf16> to vector<4x256xbf16>
    %74 = arith.mulf %72, %73 : vector<4x256xbf16>
    %c8 = arith.constant 8 : index
    %c0_37 = arith.constant 0 : index
    %c0_38 = arith.constant 0 : index
    %75 = vector.load %arg2[%c8, %c0_37, %c0_38] : memref<9x8x4xbf16, #tpu.memory_space<vmem>>, vector<1x8x4xbf16>
    %76 = vector.shape_cast %75 : vector<1x8x4xbf16> to vector<8x4xbf16>
    %cst_39 = arith.constant dense<0.000000e+00> : vector<8x256xf32>
    %77 = tpu.matmul %76, %74, %cst_39 {dimension_numbers = #tpu.dot_dimension_numbers<[1], [0], [0], [1], [0, 0, 1, 1], [], []>} : vector<8x4xbf16>, vector<4x256xbf16>, vector<8x256xf32> -> vector<8x256xf32>
    %78 = arith.addf %69, %77 : vector<8x256xf32>
    %c0_40 = arith.constant 0 : index
    %c0_41 = arith.constant 0 : index
    %79 = vector.load %arg3[%c0_40, %c0_41] : memref<8x1xf32, #tpu.memory_space<vmem>>, vector<8x1xf32>
    %80 = vector.broadcast %79 : vector<8x1xf32> to vector<8x256xf32>
    %81 = arith.addf %78, %80 : vector<8x256xf32>
    %cst_42 = arith.constant 0.000000e+00 : f32
    %82 = vector.broadcast %cst_42 : f32 to vector<8x256xf32>
    %83 = arith.maximumf %81, %82 : vector<8x256xf32>
    %c0_43 = arith.constant 0 : index
    %c0_44 = arith.constant 0 : index
    %c0_45 = arith.constant 0 : index
    %84 = vector.load %arg5[%c0_43, %c0_44, %c0_45] : memref<1x8x256xf32, #tpu.memory_space<vmem>>, vector<1x8x256xf32>
    %85 = vector.shape_cast %84 : vector<1x8x256xf32> to vector<8x256xf32>
    %86 = vector.shape_cast %83 : vector<8x256xf32> to vector<1x8x256xf32>
    tpu.vector_store %arg5[%c0_43, %c0_44, %c0_45], %86 {strides = array<i32>} : memref<1x8x256xf32, #tpu.memory_space<vmem>>, vector<1x8x256xf32>,
    return
  }
  func.func @transform_0(%arg0: i32) -> (i32, i32, i32) {
    %c0_i32 = arith.constant 0 : i32
    %c0_i32_0 = arith.constant 0 : i32
    %c0_i32_1 = arith.constant 0 : i32
    return %arg0, %c0_i32, %c0_i32_0 : i32, i32, i32
  }
  func.func @transform_1(%arg0: i32) -> (i32, i32, i32) {
    %c0_i32 = arith.constant 0 : i32
    %c0_i32_0 = arith.constant 0 : i32
    %c0_i32_1 = arith.constant 0 : i32
    %c0_i32_2 = arith.constant 0 : i32
    return %c0_i32, %c0_i32_0, %c0_i32_1 : i32, i32, i32
  }
  func.func @transform_2(%arg0: i32) -> (i32, i32) {
    %c0_i32 = arith.constant 0 : i32
    %c0_i32_0 = arith.constant 0 : i32
    %c0_i32_1 = arith.constant 0 : i32
    return %c0_i32, %c0_i32_0 : i32, i32
  }
  func.func @transform_3(%arg0: i32) -> (i32, i32) {
    %c0_i32 = arith.constant 0 : i32
    %c0_i32_0 = arith.constant 0 : i32
    %c0_i32_1 = arith.constant 0 : i32
    return %c0_i32, %c0_i32_0 : i32, i32
  }
  func.func @transform_4(%arg0: i32) -> (i32, i32, i32) {
    %c0_i32 = arith.constant 0 : i32
    %c0_i32_0 = arith.constant 0 : i32
    %c0_i32_1 = arith.constant 0 : i32
    return %arg0, %c0_i32, %c0_i32_0 : i32, i32, i32
  }
}

</mosaic_0001>

<bundles_post_ra>
// kernel: tpu_custom_call.1
= control target key start
LH: loop header
LB: loop body
LE: loop exit
PB: predicated region body
PF: predicated region fallthrough
CT: control target
= control target key end

     0   :  { %9 = vsyncpa [#allocation3], 0  ;;  %s1327_s0 = inlined_call_operand.vmem [shape: f32[2,4,256], index: 0, kind: input, shape index: {}]   ;;  %s1328_s1 = inlined_call_operand.vmem [shape: bf16[9,8,4], index: 1, kind: input, shape index: {}]   ;;  %s1329_s2 = inlined_call_operand.vmem [shape: f32[8,1], index: 2, kind: input, shape index: {}]   ;;  %s1330_s3 = inlined_call_operand.vmem [shape: bf16[2,256], index: 3, kind: input, shape index: {}]   ;;  %s1331_s4 = inlined_call_operand.hbm [shape: f32[2,8,256], index: 4, kind: output, shape index: {}]  }
   0x1   :  { %11 = vsyncpa [#allocation3 + $0x1], 0  ;;  %s1113_s15 = smov 0   ;;  %s1115_s16 = smov 0  }
   0x2   :  { %s1117_s17 = smov 0   ;;  %s1119_s18 = smov 0  }
   0x3 LB: > { %s1134_s19 = sadd.s32 4294967295, %s1075_s18   ;;  %s921_s20 = sadd.s32 4294967294, %s1075_s18   ;;  %s1075_s18 = sphi %s1119_s18, %s1337_s18   ;;  %s1071_s17 = sphi %s1117_s17, %s1336_s17   ;;  %s1067_s16 = sphi %s1115_s16, %s1335_s16   ;;  %s1063_s15 = sphi %s1113_s15, %s1334_s15  }
   0x4   : > { %s1138_s21 = sadd.s32 1, %s1075_s18   ;;  %s113_s22 = sadd.s32 1, %s1071_s17 }
   0x5   : > { %s110_s23 = ssub.s32 %s1075_s18, %s1138_s21  ;;  %p123_p0 = scmp.ne.s32.totalorder %s1071_s17, %s1067_s16 }
   0x6   : > { %p111_p1 = scmp.eq.s32.totalorder %s110_s23, 0  ;;  %p124_p2 = scmp.eq.s32.totalorder %s1134_s19, 1 }
   0x7   : > { %p129_p3 = scmp.ne.s32.totalorder %s1067_s16, %s1063_s15  ;;  %p130_p4 = scmp.eq.s32.totalorder %s921_s20, 1 }
   0x8   : > { %s1149_s24 = scalar_select %p111_p1, %s1071_s17, %s113_s22  }
   0x9   : > { %p1151_p5 = por %p124_p2, %p123_p0  ;;  %p1155_p6 = por %p130_p4, %p129_p3 }
   0xa   : > { %p924_p7 = scmp.ge.s32.totalorder %s1075_s18, 1  ;;  %p165_p8 = scmp.lt.s32.totalorder %s1075_s18, 3 }
   0xc   : > { %p166_p9 = pnand %p924_p7, %p165_p8 }
   0xd   : > { %p191_p10 = scmp.lt.s32.totalorder (!%p166_p9), %s1134_s19, 1  ;;  %v1077_v0 = vmov (!%p166_p9), 0   ;;  %s1078_s6 = smov (!%p166_p9), 17   ;;  %v835_v5 = vld [vmem:[%s1329_s2] sm:$0xff] (!%p166_p9)  ;;  %v1086_v6 = vmov (!%p166_p9), 1966171168   ;;  %v230_v8 = vlaneseq (!%p166_p9) }
   0xe   : > { %169 = sbr.rel (%p166_p9) target bundleno = 417 (0x1a1), region = 36  ;;  %311 = vmatprep.mubr.bf16.mxu0 (!%p166_p9), %v1077_v0  ;;  %361 = vmatprep.mubr.bf16.mxu1 (!%p166_p9), %v1077_v0  ;;  %s1079_s7 = smov (!%p166_p9), 16   ;;  %v228_v7 = vunpack.c.l.s4 (!%p166_p9), %v1086_v6  ;;  %v928_v11 = vld.sshfl [vmem:[%s1330_s3] sm:$0x11 pattern:$0x75316420] (!%p166_p9) }
   0xf   : > { %1011 = vset.pattern.permute.xlu0 (!%p166_p9), %v1077_v0  ;;  %s1080_s8 = smov (!%p166_p9), 15   ;;  %s1081_s9 = smov (!%p166_p9), 1   ;;  %v231_v10 = vshrl.u32 (!%p166_p9), %v230_v8, 7  ;;  %v226_v13 = vcombine.high (!%p166_p9), %v928_v11, %v928_v11  ;;  %vm210_vm0 = vcmask (!%p166_p9), 138240   ;;  %vm262_vm1 = vcmask (!%p166_p9), 130048  }
  0x10   : > { %s1082_s10 = smov (!%p166_p9), 127   ;;  %s1083_s11 = smov (!%p166_p9), 113   ;;  %v229_v9 = vunpack.c.0.s8 (!%p166_p9), %v228_v7  ;;  %vm273_vm2 = vcmask (!%p166_p9), 1041408   ;;  %vm374_vm3 = vcmask (!%p166_p9), 121856   ;;  %v929_v38 = vld [vmem:[%s1328_s1 + $0x4] sm:$0xf] (!%p166_p9) }
  0x11   : > { %s1084_s12 = smov (!%p166_p9), 112   ;;  %s1085_s13 = smov (!%p166_p9), 111   ;;  %v246_v16 = vsub.s32 (!%p166_p9), 0, %v231_v10  ;;  %vm269_vm4 = vcmask (!%p166_p9), 31744   ;;  %v257_v44 = vld [vmem:[%s1328_s1] sm:$0xf] (!%p166_p9) }
  0x12   : > { %v232_v12 = vsub.s32 (!%p166_p9), %v229_v9, %v231_v10  ;;  %vm455_vm5 = vcmask (!%p166_p9), 7168   ;;  %vm576_vm6 = vcmask (!%p166_p9), 1039360   ;;  %v934_v54 = vld [vmem:[%s1328_s1 + $0x8] sm:$0xf] (!%p166_p9)  ;;  %v937_v60 = vld [vmem:[%s1328_s1 + $0xc] sm:$0xf] (!%p166_p9) }
  0x13   : > { %vm643_vm7 = vcmask (!%p166_p9), 924672   ;;  %vm710_vm8 = vcmask (!%p166_p9), 916480   ;;  %v940_v8 = vld [vmem:[%s1328_s1 + $0x10] sm:$0xf] (!%p166_p9)  ;;  %vm772_vm9 = vcmask (!%p166_p9), 908288   ;;  %s961_s30 = sshll.u32 (!%p166_p9), %s1134_s19, 8 }
  0x14   : > { %v233_v14 = vrot.slane (!%p166_p9), %v928_v11, %v232_v12  ;;  %v240_v15 = vrot.slane (!%p166_p9), %v226_v13, %v232_v12  ;;  %v943_v13 = vld [vmem:[%s1328_s1 + $0x14] sm:$0xf] (!%p166_p9) }
  0x15   : > { %s192_s27 = scalar_select %p191_p10, %s1134_s19, 1 }
  0x16   : > { %v242_v17 = vpack.i.b16 %v233_v14, %v233_v14  ;;  %v249_v18 = vpack.i.b16 %v240_v15, %v240_v15  ;;  %v381_v19 = vshrl.u32 %v233_v14, 16  ;;  %v388_v20 = vshrl.u32 %v240_v15, 16  ;;  %s1087_s19 = smov [#allocation2]  }
  0x17   : > { %s960_s28 = sshll.u32 %s192_s27, 3 }
  0x18   : > { %s195_s5 = scalar_lea.vmem %s1327_s0, %s960_s28  ;;  %v1195_v23 = vrot.slane %v242_v17, %v246_v16  ;;  %v1198_v25 = vrot.slane %v249_v18, %v246_v16  ;;  %v382_v26 = vpack.i.b16 %v381_v19, %v381_v19  ;;  %v389_v27 = vpack.i.b16 %v388_v20, %v388_v20  ;;  %s188_s28 = sand.u32 1, %s1067_s16  }
  0x19   : > { %v197_v1 = vld [vmem:[%s195_s5] sm:$0xff]  ;;  %s925_s29 = sshll.u32 %s188_s28, 4 }
  0x1a   : > { %v1169_v2 = vpack.c.bf16 %v197_v1, %v197_v1  ;;  %v199_v3 = vcombine.high %v197_v1, %v197_v1  ;;  %v1205_v36 = vrot.slane %v382_v26, %v246_v16  ;;  %v1207_v37 = vrot.slane %v389_v27, %v246_v16  ;;  %s190_s5 = scalar_lea.vmem [#allocation2], %s925_s29 }
  0x1c   : > { %206 = vrot.lane.b32.xlu1 %v1169_v2, %s1078_s6  ;;  %258 = vrot.lane.b32.xlu0 %v1169_v2, %s1079_s7  ;;  %v1173_v4 = vpack.c.bf16 %v199_v3, %v199_v3  ;;  %v524_v58 = vsel %vm273_vm2, %v1169_v2, 0 }
  0x20   : > { %208 = vrot.lane.b32.xlu1 %v1173_v4, %s1078_s6  ;;  %260 = vrot.lane.b32.xlu0 %v1173_v4, %s1079_s7  ;;  %s862_s6 = sshll.u32 %s190_s5, 4  ;;  %s1287_s6 = int_to_ptr.vmem [resolvable:$true] %s862_s6 }
  0x24   : > { %372 = vrot.lane.b32.xlu1 %v1173_v4, %s1080_s8  ;;  %370 = vrot.lane.b32.xlu0 %v1169_v2, %s1080_s8 }
  0x28   : > { %453 = vrot.lane.b32.xlu1 %v1173_v4, %s1081_s9  ;;  %451 = vrot.lane.b32.xlu0 %v1169_v2, %s1081_s9  ;;  %s1285_s9 = scalar_lea.hbm %s1331_s4, %s961_s30 }
  0x2c   : > { %574 = vrot.lane.b32.xlu1 %v1173_v4, %s1082_s10  ;;  %572 = vrot.lane.b32.xlu0 %v1169_v2, %s1082_s10  ;;  %s848_s10 = scalar_lea.sflag [#allocation3], %s188_s28 }
  0x30   : > { %641 = vrot.lane.b32.xlu1 %v1173_v4, %s1083_s11  ;;  %639 = vrot.lane.b32.xlu0 %v1169_v2, %s1083_s11  ;;  %s1013_s11 = scalar_lea.vmem %s1287_s6, 256 }
  0x31   : > { %p1014_p11 = scmp.ne.s32.totalorder %s1287_s6, %s1013_s11 }
  0x33   : > { %p1015_p12 = pnand %p1014_p11, %p1151_p5 }
  0x34   : > { %708 = vrot.lane.b32.xlu1 %v1173_v4, %s1084_s12  ;;  %706 = vrot.lane.b32.xlu0 %v1169_v2, %s1084_s12  ;;  %s1017_s12 = sshll.u32 %s1087_s19, 4  ;;  %s1018_s12 = int_to_ptr.vmem [resolvable:$false] %s1017_s12 }
  0x35   : > { %p1016_p13 = pneg %p1015_p12  ;;  %p1020_p0 = scmp.lt.s32.totalorder %s1287_s6, %s1018_s12 }
  0x38   : > { %770 = vrot.lane.b32.xlu1 %v1173_v4, %s1085_s13  ;;  %768 = vrot.lane.b32.xlu0 %v1169_v2, %s1085_s13  ;;  %s1019_s13 = scalar_lea.vmem %s1018_s12, 512 }
  0x39   : > { %p1021_p1 = scmp.lt.s32.totalorder %s1019_s13, %s1013_s11 }
  0x3b   : > { %p1022_p2 = por %p1021_p1, %p1020_p0 }
  0x3c   : > { %838 = vperm.xlu0 %1011, %v835_v5  }
  0x3d   : > { %p1023_p3 = pnand %p1022_p2, %p1016_p13 }
  0x8e   : > { %v207_v21 = vpop.permute.xlu1 %206  ;;  %v259_v22 = vpop.permute.xlu0 %258 }
  0x8f   : > { %v216_v24 = vsel %vm210_vm0, 0, %v207_v21  ;;  %v266_v28 = vsel %vm262_vm1, 0, %v259_v22 }
  0x90   : > { %v255_v31 = vmul.bf16 %v1195_v23, %v216_v24  ;;  %v274_v34 = vsel %vm273_vm2, %v266_v28, 0  ;;  %v949_v24 = vld [vmem:[%s1328_s1 + $0x1c] sm:$0xf] }
  0x92   : > { %v209_v29 = vpop.permute.xlu1 %208  ;;  %v261_v30 = vpop.permute.xlu0 %260  ;;  %v324_v41 = vsel %vm273_vm2, %v255_v31, 0 }
  0x93   : > { %v211_v32 = vsel %vm210_vm0, %v207_v21, %v209_v29  ;;  %v263_v33 = vsel %vm262_vm1, %v259_v22, %v261_v30  ;;  %v946_v22 = vld [vmem:[%s1328_s1 + $0x18] sm:$0xf] }
  0x94   : > { %930 = vmatprep.subr.msk.bf16.mxu0 %vm273_vm2, %v263_v33  ;;  %v256_v35 = vmul.bf16 %v1198_v25, %v211_v32 }
  0x95   : > { %280 = vmatpush1.bf16.msra.mxu0 %v274_v34 }
  0x96   : > { %932 = vmatprep.subr.msk.bf16.mxu1 %vm273_vm2, %v256_v35  ;;  %v373_v39 = vpop.permute.xlu1 %372  ;;  %v371_v40 = vpop.permute.xlu0 %370 }
  0x97   : > { %v375_v42 = vsel %vm374_vm3, %v371_v40, %v373_v39  ;;  %v379_v43 = vsel %vm374_vm3, 0, %v371_v40  ;;  %330 = vmatpush1.bf16.msra.mxu1 %v324_v41 }
  0x98   : > { %v395_v45 = vmul.bf16 %v1205_v36, %v379_v43  ;;  %v396_v46 = vmul.bf16 %v1207_v37, %v375_v42  ;;  %931 = vmatmul.mubr.msk.bf16.vlgmr.msra.gmra.mrb[0].mxu0 %vm269_vm4, %v929_v38 }
  0x99   : > { %440 = vmatprep.mubr.bf16.mxu0 %v1077_v0 }
  0x9a   : > { %933 = vmatmul.mubr.msk.bf16.vlgmr.msra.gmra.mrb[0].mxu1 %vm269_vm4, %v257_v44  ;;  %v454_v47 = vpop.permute.xlu1 %453  ;;  %935 = vmatprep.subr.msk.bf16.mxu0 %vm273_vm2, %v396_v46  ;;  %v452_v48 = vpop.permute.xlu0 %451  ;;  %v403_v49 = vsel %vm273_vm2, %v395_v45, 0 }
  0x9b   : > { %v456_v50 = vsel %vm455_vm5, %v452_v48, %v454_v47  ;;  %v460_v51 = vsel %vm455_vm5, 0, %v452_v48  ;;  %409 = vmatpush1.bf16.msra.mxu0 %v403_v49  ;;  %507 = vmatprep.mubr.bf16.mxu1 %v1077_v0 }
  0x9c   : > { %v462_v52 = vmul.bf16 %v460_v51, %v1195_v23  ;;  %v463_v53 = vmul.bf16 %v456_v50, %v1198_v25  ;;  %941 = vmatprep.subr.msk.bf16.mxu0 %vm273_vm2, %v1173_v4 }
  0x9e   : > { %938 = vmatprep.subr.msk.bf16.mxu1 %vm273_vm2, %v463_v53  ;;  %v470_v55 = vsel %vm273_vm2, %v462_v52, 0  ;;  %v575_v56 = vpop.permute.xlu1 %574  ;;  %v573_v57 = vpop.permute.xlu0 %572 }
  0x9f   : > { %476 = vmatpush1.bf16.msra.mxu1 %v470_v55  ;;  %v581_v59 = vsel %vm576_vm6, %v575_v56, 0  ;;  %v577_v61 = vsel %vm576_vm6, %v573_v57, %v575_v56 }
  0xa0   : > { %936 = vmatmul.mubr.msk.bf16.vlgmr.msra.gmra.mrb[4].mxu0 %vm269_vm4, %v934_v54  ;;  %v584_v62 = vmul.bf16 %v581_v59, %v1207_v37  ;;  %v583_v63 = vmul.bf16 %v577_v61, %v1205_v36 }
  0xa1   : > { %530 = vmatpush1.bf16.msra.mxu0 %v524_v58  ;;  %561 = vmatprep.mubr.bf16.mxu0 %v1077_v0 }
  0xa2   : > { %939 = vmatmul.mubr.msk.bf16.vlgmr.msra.gmra.mrb[4].mxu1 %vm269_vm4, %v937_v60  ;;  %v642_v1 = vpop.permute.xlu1 %641  ;;  %944 = vmatprep.subr.msk.bf16.mxu1 %vm273_vm2, %v584_v62  ;;  %v640_v2 = vpop.permute.xlu0 %639  ;;  %v591_v3 = vsel %vm273_vm2, %v583_v63, 0 }
  0xa3   : > { %v648_v4 = vsel %vm643_vm7, %v642_v1, 0  ;;  %v644_v5 = vsel %vm643_vm7, %v640_v2, %v642_v1  ;;  %597 = vmatpush1.bf16.msra.mxu1 %v591_v3  ;;  %628 = vmatprep.mubr.bf16.mxu1 %v1077_v0 }
  0xa4   : > { %v651_v6 = vmul.bf16 %v648_v4, %v1198_v25  ;;  %v650_v7 = vmul.bf16 %v644_v5, %v1195_v23  ;;  %v952_v25 = vld [vmem:[%s1328_s1 + $0x20] sm:$0xf] }
  0xa6   : > { %v709_v9 = vpop.permute.xlu1 %708  ;;  %947 = vmatprep.subr.msk.bf16.mxu0 %vm273_vm2, %v651_v6  ;;  %v707_v10 = vpop.permute.xlu0 %706  ;;  %v658_v11 = vsel %vm273_vm2, %v650_v7, 0 }
  0xa7   : > { %v714_v12 = vsel %vm710_vm8, %v709_v9, 0  ;;  %v711_v14 = vsel %vm710_vm8, %v707_v10, %v709_v9 }
  0xa8   : > { %942 = vmatmul.mubr.msk.bf16.vlgmr.msra.gmra.mrb[8].mxu0 %vm269_vm4, %v940_v8  ;;  %v721_v15 = vsel %vm273_vm2, %v711_v14, 0  ;;  %950 = vmatprep.subr.msk.bf16.mxu1 %vm273_vm2, %v714_v12 }
  0xa9   : > { %664 = vmatpush1.bf16.msra.mxu0 %v658_v11  ;;  %695 = vmatprep.mubr.bf16.mxu0 %v1077_v0 }
  0xaa   : > { %945 = vmatmul.mubr.msk.bf16.vlgmr.msra.gmra.mrb[8].mxu1 %vm269_vm4, %v943_v13  ;;  %v771_v16 = vpop.permute.xlu1 %770  ;;  %v769_v17 = vpop.permute.xlu0 %768 }
  0xab   : > { %726 = vmatpush1.bf16.msra.mxu1 %v721_v15  ;;  %v777_v18 = vsel %vm772_vm9, %v771_v16, 0  ;;  %v773_v19 = vsel %vm772_vm9, %v769_v17, %v771_v16  ;;  %757 = vmatprep.mubr.bf16.mxu1 %v1077_v0 }
  0xac   : > { %v780_v20 = vmul.bf16 %v777_v18, %v1207_v37  ;;  %v779_v21 = vmul.bf16 %v773_v19, %v1205_v36 }
  0xae   : > { %953 = vmatprep.subr.msk.bf16.mxu0 %vm273_vm2, %v780_v20  ;;  %v787_v23 = vsel %vm273_vm2, %v779_v21, 0 }
  0xb0   : > { %948 = vmatmul.mubr.msk.bf16.vlgmr.msra.gmra.mrb[12].mxu0 %vm269_vm4, %v946_v22 }
  0xb1   : > { %793 = vmatpush1.bf16.msra.mxu0 %v787_v23  ;;  %824 = vmatprep.mubr.bf16.mxu0 %v1077_v0 }
  0xb2   : > { %951 = vmatmul.mubr.msk.bf16.vlgmr.msra.gmra.mrb[12].mxu1 %vm269_vm4, %v949_v24 }
  0xb8   : > { %954 = vmatmul.mubr.msk.bf16.vlgmr.msra.gmra.mrb[16].mxu0 %vm269_vm4, %v952_v25 }
  0xbb   : > { %v839_v9 = vpop.permute.xlu0 %838 }
 0x16b   : > { %v313_v26 = vpop.f32.mrb[0].mxu0 }
 0x16c   : > { %v315_v27 = vpop.f32.mrb[1].mxu0 }
 0x16d   : > { %v317_v28 = vpop.f32.mrb[2].mxu0  ;;  %v363_v29 = vpop.f32.mrb[0].mxu1 }
 0x16e   : > { %v364_v30 = vadd.f32 %v363_v29, %v313_v26  ;;  %v318_v31 = vpop.f32.mrb[3].mxu0  ;;  %v365_v32 = vpop.f32.mrb[1].mxu1 }
 0x16f   : > { %v366_v33 = vadd.f32 %v365_v32, %v315_v27  ;;  %v367_v34 = vpop.f32.mrb[2].mxu1 }
 0x170   : > { %v368_v35 = vpop.f32.mrb[3].mxu1 }
 0x173   : > { %v442_v36 = vpop.f32.mrb[4].mxu0 }
 0x174   : > { %v449_v0 = vadd.f32 %v442_v36, %v364_v30  ;;  %v444_v37 = vpop.f32.mrb[5].mxu0 }
 0x175   : > { %v450_v38 = vadd.f32 %v444_v37, %v366_v33  ;;  %v446_v39 = vpop.f32.mrb[6].mxu0  ;;  %v509_v40 = vpop.f32.mrb[4].mxu1 }
 0x176   : > { %v516_v41 = vadd.f32 %v509_v40, %v449_v0  ;;  %v447_v42 = vpop.f32.mrb[7].mxu0  ;;  %v511_v43 = vpop.f32.mrb[5].mxu1 }
 0x177   : > { %v517_v44 = vadd.f32 %v511_v43, %v450_v38  ;;  %v513_v45 = vpop.f32.mrb[6].mxu1 }
 0x178   : > { %v514_v46 = vpop.f32.mrb[7].mxu1 }
 0x17b   : > { %v563_v47 = vpop.f32.mrb[8].mxu0 }
 0x17c   : > { %v570_v48 = vadd.f32 %v563_v47, %v516_v41  ;;  %v565_v49 = vpop.f32.mrb[9].mxu0 }
 0x17d   : > { %v571_v50 = vadd.f32 %v565_v49, %v517_v44  ;;  %v567_v51 = vpop.f32.mrb[10].mxu0  ;;  %v630_v52 = vpop.f32.mrb[8].mxu1 }
 0x17e   : > { %v637_v53 = vadd.f32 %v630_v52, %v570_v48  ;;  %v568_v54 = vpop.f32.mrb[11].mxu0  ;;  %v632_v55 = vpop.f32.mrb[9].mxu1 }
 0x17f   : > { %v638_v56 = vadd.f32 %v632_v55, %v571_v50  ;;  %v634_v57 = vpop.f32.mrb[10].mxu1 }
 0x180   : > { %v635_v58 = vpop.f32.mrb[11].mxu1 }
 0x183   : > { %v697_v59 = vpop.f32.mrb[12].mxu0 }
 0x184   : > { %v704_v60 = vadd.f32 %v697_v59, %v637_v53  ;;  %v699_v61 = vpop.f32.mrb[13].mxu0 }
 0x185   : > { %v705_v62 = vadd.f32 %v699_v61, %v638_v56  ;;  %v701_v63 = vpop.f32.mrb[14].mxu0  ;;  %v759_v1 = vpop.f32.mrb[12].mxu1 }
 0x186   : > { %v766_v2 = vadd.f32 %v759_v1, %v704_v60  ;;  %v702_v3 = vpop.f32.mrb[15].mxu0  ;;  %v761_v4 = vpop.f32.mrb[13].mxu1 }
 0x187   : > { %v767_v5 = vadd.f32 %v761_v4, %v705_v62  ;;  %v763_v6 = vpop.f32.mrb[14].mxu1 }
 0x188   : > { %v764_v7 = vpop.f32.mrb[15].mxu1 }
 0x18b   : > { %v826_v8 = vpop.f32.mrb[16].mxu0 }
 0x18c   : > { %v833_v10 = vadd.f32 %v826_v8, %v766_v2  ;;  %v828_v11 = vpop.f32.mrb[17].mxu0 }
 0x18d   : > { %v834_v12 = vadd.f32 %v828_v11, %v767_v5  ;;  %v830_v13 = vpop.f32.mrb[18].mxu0 }
 0x18e   : > { %v841_v14 = vadd.f32 %v839_v9, %v833_v10  ;;  %v831_v15 = vpop.f32.mrb[19].mxu0 }
 0x18f   : > { %v842_v16 = vadd.f32 %v839_v9, %v834_v12 }
 0x190   : > { %v843_v17 = vmax.f32 %v841_v14, 0.0 }
 0x191   : > { %v844_v18 = vmax.f32 %v842_v16, 0.0 }
 0x192   : > { %845 = vst [vmem:[%s190_s5] sm:$0xff] %v843_v17 }
 0x193   : > { %846 = vst [vmem:[%s190_s5 + $0x8] sm:$0xff] %v844_v18 }
 0x194   : > { %1026 = shalt.err (!%p1023_p3)
}
 0x195   : > { %s1027_s14 = scalar_lea.hbm %s1285_s9, 256  ;;  %s1031_s23 = scalar_lea.hbm %s1331_s4, 512 }
 0x196   : > { %p1028_p4 = scmp.ne.s32.totalorder %s1285_s9, %s1027_s14  ;;  %p1032_p9 = scmp.lt.u32.totalorder %s1285_s9, %s1331_s4 }
 0x197   : > { %p1033_p10 = scmp.lt.u32.totalorder %s1031_s23, %s1027_s14  ;;  %p1035_p12 = scmp.lt.u32.totalorder %s1027_s14, %s1285_s9 }
 0x198   : > { %p1029_p7 = pnand %p1028_p4, %p1151_p5 }
 0x199   : > { %p1034_p11 = por %p1033_p10, %p1032_p9 }
 0x19a   : > { %p1030_p8 = pneg %p1029_p7 }
 0x19b   : > { %p1036_p13 = por %p1035_p12, %p1034_p11 }
 0x19d   : > { %p1037_p0 = pnand %p1036_p13, %p1030_p8 }
 0x19f   : > { %1040 = shalt.err (!%p1037_p0)
}
 0x1a0   : > { %962 = dma.vmem_to_hbm [thread:$0]  (%p1151_p5), %s1287_s6, 256, %s1285_s9, %s848_s10  }
 0x1a1 PF: > { %p968_p1 = scmp.ge.s32.totalorder %s1075_s18, 2  ;;  %s874_s29 = sand.u32 1, %s1063_s15  }
 0x1a2   : > { %s875_s30 = scalar_lea.sflag [#allocation3], %s874_s29 }
 0x1a3   : > { %p965_p2 = pnand %p968_p1, %p1155_p6 }
 0x1a5   : > { %1058 = dma.done.wait (!%p965_p2), %s875_s30, 256  }
 0x1a6   : > { %1060 = vsyncadd (!%p965_p2), %s875_s30, 4294967040  ;;  %p14_p3 = scmp.ge.s32.totalorder %s1138_s21, 4   ;;  %s1334_s15 = smov %s1067_s16 }
 0x1a7   : > { %s1335_s16 = smov %s1071_s17  ;;  %s1336_s17 = smov %s1149_s24 }
 0x1a8   : > { %s1337_s18 = smov %s1138_s21  ;;  %16 = sbr.rel (!%p14_p3) target bundleno = 3 (0x3), region = 79 }
 0x1af   :  { %880 = vsyncpa [#allocation3], 1 }
 0x1b0   :  { %882 = vsyncpa [#allocation3 + $0x1], 1 }

</bundles_post_ra>
